<compile_context>
chip_gen: v5e
topology: v5e:2x2
jax: 0.10.0
libtpu: 0.0.40
codegen_flags: <defaults>
</compile_context>

<pallas_src>
import jax
import jax.numpy as jnp
from jax.experimental import pallas as pl
from jax.experimental.pallas import tpu as pltpu


def _ols_kernel(x_ref, w_ref, wl_ref, sr_ref, o_ref):
    # x_ref : (Bt, L, Vt)  raw context windows, native layout (lanes = variables)
    # w_ref : (H, L)       effective weight (mean re-add folded in), resident
    # wl_ref: (H, 1)       weight column acting on the stdev "feature", resident
    # sr_ref: (1, L)       row of 1/L -> stats via MXU instead of sublane reduce
    # o_ref : (Bt, H, Vt)
    x = x_ref[...]
    bt = x.shape[0]
    f32 = jnp.float32

    sr = jnp.broadcast_to(sr_ref[...], (bt,) + tuple(sr_ref.shape))   # (Bt,1,L)
    w = jnp.broadcast_to(w_ref[...], (bt,) + tuple(w_ref.shape))      # (Bt,H,L)

    # Per-column mean over the context (MXU, batched (1,L)@(L,Vt)).
    mean = jnp.einsum("brl,blv->brv", sr, x,
                      preferred_element_type=f32)                     # (Bt,1,Vt)
    # Centered (robust) population variance, also via the MXU.
    xc = x.astype(f32) - mean                                         # (Bt,L,Vt)
    msq = jnp.einsum("brl,blv->brv", sr, xc * xc,
                     preferred_element_type=f32)                      # (Bt,1,Vt)
    stdev = jnp.sqrt(jnp.maximum(msq, 0.0) + 1e-5)                    # (Bt,1,Vt)

    # Main prediction: W_eff @ x already includes the "+ mean" re-add.
    pred = jnp.einsum("bhl,blv->bhv", w, x,
                      preferred_element_type=f32)                     # (Bt,H,Vt)
    pred = pred + wl_ref[...][None] * stdev                           # (Bt,H,Vt)
    o_ref[...] = pred.astype(o_ref.dtype)


def _choose_tiles(B, L, H, V, itemsize=4, target_tile_bytes=1 << 20):
    """Pick (batch tile, variable tile) so one grid step moves ~target bytes."""
    pad8 = lambda n: -(-n // 8) * 8
    pad128 = lambda n: -(-n // 128) * 128
    # Padded VMEM bytes per column for the x block + out block.
    col_bytes = (pad8(L) + pad8(H)) * itemsize

    # Lane tile over variables: either the full V (always a legal block) or a
    # multiple of 128 when V is large.
    if V <= 256 or col_bytes * V <= target_tile_bytes:
        vt = V
    else:
        vt = int(max(128, min((target_tile_bytes // col_bytes) // 128 * 128, 4096)))
        if vt >= V:
            vt = V

    # Batch tile: widen until the (padded) per-step block reaches the target.
    step_bytes = col_bytes * pad128(vt)
    bt = int(max(1, min(B, target_tile_bytes // step_bytes)))

    # v7x has two TensorCores: ensure the "parallel" grid has >= 2 steps when
    # there is enough work to be worth sharding (v5e/v6e are single-TC).
    total_bytes = B * V * (L + H) * itemsize
    if total_bytes > (1 << 20) and (-(-B // bt)) * (-(-V // vt)) < 2:
        if bt > 1:
            bt = -(-bt // 2)
        elif vt > 128:
            vt = int(max(128, (vt // 2) // 128 * 128))
    return bt, vt


def ols_forward(x_enc, x_mark_enc, x_dec, x_mark_dec, weight, horizon):
    """weight: (horizon, L+1) from nn.Linear(L+1, H, bias=False). Returns (B, H, V)."""
    del x_mark_enc, x_dec, x_mark_dec  # unused by the reference forward output
    B, L, V = x_enc.shape
    H = horizon
    assert weight.shape == (H, L + 1)

    # ---- wrapper-side weight prep (one-time, tiny) ----
    w_main = weight[:, :L].astype(jnp.float32)                 # (H, L)
    w_last = weight[:, L:].astype(jnp.float32)                 # (H, 1)
    # Fold the "+ mean" re-add:
    #   pred = W_main @ (x - mean) + w_last*stdev + mean
    #        = (W_main + (1 - rowsum(W_main))/L) @ x + w_last*stdev
    coef = (1.0 - jnp.sum(w_main, axis=1, keepdims=True)) / L  # (H, 1)
    w_eff = w_main + coef                                      # (H, L)
    stats_row = jnp.full((1, L), 1.0 / L, dtype=jnp.float32)   # (1, L)

    bt, vt = _choose_tiles(B, L, H, V, itemsize=x_enc.dtype.itemsize)
    grid = (pl.cdiv(B, bt), pl.cdiv(V, vt))

    out = pl.pallas_call(
        _ols_kernel,
        out_shape=jax.ShapeDtypeStruct((B, H, V), x_enc.dtype),
        grid=grid,
        in_specs=[
            pl.BlockSpec((bt, L, vt), lambda bi, vj: (bi, 0, vj)),  # x (native)
            pl.BlockSpec((H, L), lambda bi, vj: (0, 0)),            # W_eff (resident)
            pl.BlockSpec((H, 1), lambda bi, vj: (0, 0)),            # w_last
            pl.BlockSpec((1, L), lambda bi, vj: (0, 0)),            # 1/L stats row
        ],
        out_specs=pl.BlockSpec((bt, H, vt), lambda bi, vj: (bi, 0, vj)),
        compiler_params=pltpu.CompilerParams(
            dimension_semantics=("parallel", "parallel"),
        ),
    )(x_enc, w_eff, w_last, stats_row)
    return out


def _reference(x_enc, weight, horizon):
    # Plain-JAX reference mirroring the PyTorch forward (instance_norm=True).
    means = jnp.mean(x_enc, axis=1, keepdims=True)
    x_c = x_enc - means
    var = jnp.mean(x_c * x_c, axis=1, keepdims=True)
    stdev = jnp.sqrt(var + 1e-5)
    feats = jnp.concatenate([x_c, stdev], axis=1)              # (B, L+1, V)
    feats_t = jnp.transpose(feats, (0, 2, 1))                  # (B, V, L+1)
    pred = jnp.einsum("bvl,hl->bvh", feats_t, weight)          # (B, V, H)
    preds = jnp.transpose(pred, (0, 2, 1))                     # (B, H, V)
    return preds + means


if __name__ == "__main__":
    # Small shapes consistent with the module: batch=2, seq_len=16, pred_len=8, 4 variables.
    B, L, H, V = 2, 16, 8, 4

    key = jax.random.PRNGKey(0)
    k_x, k_xd, k_w = jax.random.split(key, 3)

    x_enc = jax.random.normal(k_x, (B, L, V), dtype=jnp.float32)
    x_mark_enc = jnp.zeros((B, L, 1), dtype=jnp.float32)
    x_dec = jax.random.normal(k_xd, (B, H, V), dtype=jnp.float32)
    x_mark_dec = jnp.zeros((B, H, 1), dtype=jnp.float32)

    # nn.Linear(L+1, H, bias=False) default init: U(-1/sqrt(L+1), 1/sqrt(L+1))
    bound = 1.0 / jnp.sqrt(jnp.float32(L + 1))
    weight = jax.random.uniform(k_w, (H, L + 1), dtype=jnp.float32,
                                minval=-bound, maxval=bound)

    out = ols_forward(x_enc, x_mark_enc, x_dec, x_mark_dec, weight, horizon=H)
    out = jax.block_until_ready(out)

    ref = _reference(x_enc, weight, horizon=H)
    assert out.shape == (B, H, V)
    assert jnp.allclose(out, ref, atol=2e-4, rtol=2e-4), "mismatch vs reference"

    print("KERNEL_OK")
</pallas_src>

<mosaic_0001>
module attributes {stable_mosaic.version = 11 : i64} {
  func.func @_ols_kernel(%arg0: i32, %arg1: i32, %arg2: memref<2x16x4xf32, #tpu.memory_space<vmem>>, %arg3: memref<8x16xf32, #tpu.memory_space<vmem>>, %arg4: memref<8x1xf32, #tpu.memory_space<vmem>>, %arg5: memref<1x16xf32, #tpu.memory_space<vmem>>, %arg6: memref<2x8x4xf32, #tpu.memory_space<vmem>>) attributes {dimension_semantics = [#tpu.dimension_semantics<parallel>, #tpu.dimension_semantics<parallel>], iteration_bounds = array<i64: 1, 1>, scalar_prefetch = 0 : i64, scratch_operands = 0 : i64, tpu.core_type = #tpu.core_type<tc>, window_params = [{transform_indices = @transform_0, window_bounds = array<i64: 2, 16, 4>}, {pipeline_mode = #tpu.pipeline_mode<synchronous>, transform_indices = @transform_1, window_bounds = array<i64: 8, 16>}, {pipeline_mode = #tpu.pipeline_mode<synchronous>, transform_indices = @transform_2, window_bounds = array<i64: 8, 1>}, {pipeline_mode = #tpu.pipeline_mode<synchronous>, transform_indices = @transform_3, window_bounds = array<i64: 1, 16>}, {transform_indices = @transform_4, window_bounds = array<i64: 2, 8, 4>}]} {
    %c0 = arith.constant 0 : index
    %c0_0 = arith.constant 0 : index
    %c0_1 = arith.constant 0 : index
    %0 = vector.load %arg2[%c0, %c0_0, %c0_1] : memref<2x16x4xf32, #tpu.memory_space<vmem>>, vector<2x16x4xf32>
    %c0_2 = arith.constant 0 : index
    %c0_3 = arith.constant 0 : index
    %1 = vector.load %arg5[%c0_2, %c0_3] : memref<1x16xf32, #tpu.memory_space<vmem>>, vector<1x16xf32>
    %2 = vector.shape_cast %1 : vector<1x16xf32> to vector<1x1x16xf32>
    %3 = vector.broadcast %2 : vector<1x1x16xf32> to vector<2x1x16xf32>
    %c0_4 = arith.constant 0 : index
    %c0_5 = arith.constant 0 : index
    %4 = vector.load %arg3[%c0_4, %c0_5] : memref<8x16xf32, #tpu.memory_space<vmem>>, vector<8x16xf32>
    %5 = vector.shape_cast %4 : vector<8x16xf32> to vector<1x8x16xf32>
    %6 = vector.broadcast %5 : vector<1x8x16xf32> to vector<2x8x16xf32>
    "tpu.trace_start"() <{level = 10 : i32, message = "brl,blv->brv"}> : () -> ()
    %cst = arith.constant dense<0.000000e+00> : vector<2x1x4xf32>
    %7 = tpu.matmul %3, %0, %cst {dimension_numbers = #tpu.dot_dimension_numbers<[2], [1], [1], [2], [0, 0, 0, 1, 1, 2], [0], [0]>} : vector<2x1x16xf32>, vector<2x16x4xf32>, vector<2x1x4xf32> -> vector<2x1x4xf32>
    "tpu.trace_stop"() : () -> ()
    %8 = vector.broadcast %7 : vector<2x1x4xf32> to vector<2x16x4xf32>
    %9 = arith.subf %0, %8 : vector<2x16x4xf32>
    %10 = arith.mulf %9, %9 : vector<2x16x4xf32>
    "tpu.trace_start"() <{level = 10 : i32, message = "brl,blv->brv"}> : () -> ()
    %cst_6 = arith.constant dense<0.000000e+00> : vector<2x1x4xf32>
    %11 = tpu.matmul %3, %10, %cst_6 {dimension_numbers = #tpu.dot_dimension_numbers<[2], [1], [1], [2], [0, 0, 0, 1, 1, 2], [0], [0]>} : vector<2x1x16xf32>, vector<2x16x4xf32>, vector<2x1x4xf32> -> vector<2x1x4xf32>
    "tpu.trace_stop"() : () -> ()
    %cst_7 = arith.constant 0.000000e+00 : f32
    %12 = vector.broadcast %cst_7 : f32 to vector<2x1x4xf32>
    %13 = arith.maximumf %11, %12 : vector<2x1x4xf32>
    %cst_8 = arith.constant 9.99999974E-6 : f32
    %14 = vector.broadcast %cst_8 : f32 to vector<2x1x4xf32>
    %15 = arith.addf %13, %14 : vector<2x1x4xf32>
    %16 = math.sqrt %15 : vector<2x1x4xf32>
    "tpu.trace_start"() <{level = 10 : i32, message = "bhl,blv->bhv"}> : () -> ()
    %cst_9 = arith.constant dense<0.000000e+00> : vector<2x8x4xf32>
    %17 = tpu.matmul %6, %0, %cst_9 {dimension_numbers = #tpu.dot_dimension_numbers<[2], [1], [1], [2], [0, 0, 0, 1, 1, 2], [0], [0]>} : vector<2x8x16xf32>, vector<2x16x4xf32>, vector<2x8x4xf32> -> vector<2x8x4xf32>
    "tpu.trace_stop"() : () -> ()
    %c0_10 = arith.constant 0 : index
    %c0_11 = arith.constant 0 : index
    %18 = vector.load %arg4[%c0_10, %c0_11] : memref<8x1xf32, #tpu.memory_space<vmem>>, vector<8x1xf32>
    %19 = vector.shape_cast %18 : vector<8x1xf32> to vector<1x8x1xf32>
    %20 = vector.broadcast %19 : vector<1x8x1xf32> to vector<2x8x4xf32>
    %21 = vector.broadcast %16 : vector<2x1x4xf32> to vector<2x8x4xf32>
    %22 = arith.mulf %20, %21 : vector<2x8x4xf32>
    %23 = arith.addf %17, %22 : vector<2x8x4xf32>
    %c0_12 = arith.constant 0 : index
    %c0_13 = arith.constant 0 : index
    %c0_14 = arith.constant 0 : index
    %24 = vector.load %arg6[%c0_12, %c0_13, %c0_14] : memref<2x8x4xf32, #tpu.memory_space<vmem>>, vector<2x8x4xf32>
    tpu.vector_store %arg6[%c0_12, %c0_13, %c0_14], %23 {strides = array<i32>} : memref<2x8x4xf32, #tpu.memory_space<vmem>>, vector<2x8x4xf32>,
    return
  }
  func.func @transform_0(%arg0: i32, %arg1: i32) -> (i32, i32, i32) {
    %c0_i32 = arith.constant 0 : i32
    %c0_i32_0 = arith.constant 0 : i32
    return %arg0, %c0_i32, %arg1 : i32, i32, i32
  }
  func.func @transform_1(%arg0: i32, %arg1: i32) -> (i32, i32) {
    %c0_i32 = arith.constant 0 : i32
    %c0_i32_0 = arith.constant 0 : i32
    %c0_i32_1 = arith.constant 0 : i32
    return %c0_i32, %c0_i32_0 : i32, i32
  }
  func.func @transform_2(%arg0: i32, %arg1: i32) -> (i32, i32) {
    %c0_i32 = arith.constant 0 : i32
    %c0_i32_0 = arith.constant 0 : i32
    %c0_i32_1 = arith.constant 0 : i32
    return %c0_i32, %c0_i32_0 : i32, i32
  }
  func.func @transform_3(%arg0: i32, %arg1: i32) -> (i32, i32) {
    %c0_i32 = arith.constant 0 : i32
    %c0_i32_0 = arith.constant 0 : i32
    %c0_i32_1 = arith.constant 0 : i32
    return %c0_i32, %c0_i32_0 : i32, i32
  }
  func.func @transform_4(%arg0: i32, %arg1: i32) -> (i32, i32, i32) {
    %c0_i32 = arith.constant 0 : i32
    %c0_i32_0 = arith.constant 0 : i32
    return %arg0, %c0_i32, %arg1 : i32, i32, i32
  }
}

</mosaic_0001>

<bundles_post_ra>
// kernel: tpu_custom_call.1
= control target key start
LH: loop header
LB: loop body
LE: loop exit
PB: predicated region body
PF: predicated region fallthrough
CT: control target
= control target key end

     0   :  { %vm23_vm0 = vcmask 130048   ;;  %v217_v7 = vmov 0   ;;  %vm198_vm5 = vcmask 31744   ;;  %s276_s0 = inlined_call_operand.vmem [shape: f32[2,16,4], index: 0, kind: input, shape index: {}]   ;;  %s277_s3 = inlined_call_operand.vmem [shape: f32[1,16], index: 3, kind: input, shape index: {}]   ;;  %s278_s1 = inlined_call_operand.vmem [shape: f32[8,16], index: 1, kind: input, shape index: {}]   ;;  %s279_s2 = inlined_call_operand.vmem [shape: f32[8,1], index: 2, kind: input, shape index: {}]   ;;  %s280_s4 = inlined_call_operand.vmem [shape: f32[2,8,4], index: 4, kind: output, shape index: {}]  }
   0x1   :  { %v18_v0 = vld [vmem:[%s276_s0 + $0x8] sm:$0xff]  ;;  %v20_v1 = vld [vmem:[%s276_s0 + $0x18] sm:$0xff]  ;;  %v17_v2 = vld [vmem:[%s276_s0] sm:$0xff]  ;;  %212 = vset.pattern.permute.xlu0 %v217_v7 }
   0x2   :  { %41 = vmatpush.msra.mxu0 %v18_v0  ;;  %61 = vmatpush.msra.mxu1 %v20_v1  ;;  %v19_v3 = vld [vmem:[%s276_s0 + $0x10] sm:$0xff]  ;;  %v21_v4 = vld [vmem:[%s277_s3] sm:$0x1] }
   0x3   :  { %v22_v5 = vld [vmem:[%s278_s1] sm:$0xff] }
   0x4   :  { %42 = vmatpush.msra.mxu0 %v17_v2  ;;  %62 = vmatpush.msra.mxu1 %v19_v3  ;;  %v145_v6 = vld [vmem:[%s279_s2] sm:$0xff] }
   0x5   :  { %205 = vmatmul.msk.f32.vlgmr.msra.gmra.mxu0 %vm23_vm0, %v21_v4  ;;  %206 = vmatmul.msk.f32.vlgmr.msra.gmra.mxu1 %vm23_vm0, %v21_v4 }
   0x6   :  { %172 = vmatpush.msrb.mxu0 %v18_v0  ;;  %192 = vmatpush.msrb.mxu1 %v20_v1 }
   0x7   :  { %148 = vperm.xlu0 %212, %v145_v6  }
   0x8   :  { %173 = vmatpush.msrb.mxu0 %v17_v2  ;;  %193 = vmatpush.msrb.mxu1 %v19_v3 }
   0xd   :  { %209 = vmatmul.msk.f32.vlgmr.msrb.gmra.mxu0 %vm23_vm0, %v22_v5  ;;  %210 = vmatmul.msk.f32.vlgmr.msrb.gmra.mxu1 %vm23_vm0, %v22_v5 }
  0x79   :  { %v149_v43 = vpop.permute.xlu0 %148 }
  0x82   :  { %v44_v8 = vpop.f32.mrf.mxu0  ;;  %v64_v9 = vpop.f32.mrf.mxu1 }
  0x83   :  { %v67_v10 = vperm.slane %v44_v8, 0  ;;  %v68_v11 = vperm.slane %v64_v9, 0 }
  0x85   :  { %v70_v12 = vsub.f32 %v18_v0, %v67_v10  ;;  %v72_v13 = vsub.f32 %v20_v1, %v68_v11  ;;  %v69_v14 = vsub.f32 %v17_v2, %v67_v10  ;;  %v71_v15 = vsub.f32 %v19_v3, %v68_v11 }
  0x87   :  { %v74_v16 = vmul.f32 %v70_v12, %v70_v12  ;;  %v76_v17 = vmul.f32 %v72_v13, %v72_v13  ;;  %v73_v18 = vmul.f32 %v69_v14, %v69_v14  ;;  %v75_v19 = vmul.f32 %v71_v15, %v71_v15 }
  0x89   :  { %91 = vmatpush.msra.mxu2 %v74_v16  ;;  %111 = vmatpush.msra.mxu3 %v76_v17 }
  0x8a   :  { %v175_v49 = vpop.f32.mrf.mxu0  ;;  %v195_v51 = vpop.f32.mrf.mxu1 }
  0x8b   :  { %92 = vmatpush.msra.mxu2 %v73_v18  ;;  %112 = vmatpush.msra.mxu3 %v75_v19 }
  0x8c   :  { %207 = vmatmul.msk.f32.vlgmr.msra.gmra.mxu2 %vm23_vm0, %v21_v4  ;;  %208 = vmatmul.msk.f32.vlgmr.msra.gmra.mxu3 %vm23_vm0, %v21_v4 }
 0x10f   :  { %v94_v20 = vpop.f32.mrf.mxu2  ;;  %v114_v21 = vpop.f32.mrf.mxu3 }
 0x110   :  { %v117_v22 = vmax.f32 %v94_v20, 0.0  ;;  %v118_v23 = vmax.f32 %v114_v21, 0.0 }
 0x112   :  { %v119_v24 = vadd.f32 1e-05, %v117_v22  ;;  %v120_v25 = vadd.f32 1e-05, %v118_v23 }
 0x114   :  { %213 = vrsqrt.f32 %v119_v24  ;;  %vm128_vm1 = vcmp.eq.f32.partialorder %v119_v24, inf  ;;  %v131_v39 = vand.u32 2147483648, %v119_v24  ;;  %vm130_vm2 = vcmp.eq.f32.partialorder %v119_v24, 0.0 }
 0x115   :  { %215 = vrsqrt.f32 %v120_v25  ;;  %vm140_vm3 = vcmp.eq.f32.partialorder %v120_v25, inf  ;;  %v143_v42 = vand.u32 2147483648, %v120_v25  ;;  %vm142_vm4 = vcmp.eq.f32.partialorder %v120_v25, 0.0 }
 0x11a   :  { %v214_v26 = vpop.eup %213 }
 0x11b   :  { %v216_v27 = vpop.eup %215  ;;  %v122_v28 = vmul.f32 %v214_v26, %v119_v24 }
 0x11c   :  { %v134_v29 = vmul.f32 %v216_v27, %v120_v25 }
 0x11d   :  { %v123_v30 = vmul.f32 %v214_v26, %v122_v28 }
 0x11e   :  { %v135_v31 = vmul.f32 %v216_v27, %v134_v29 }
 0x11f   :  { %v124_v32 = vmul.f32 0.5, %v123_v30 }
 0x120   :  { %v136_v33 = vmul.f32 0.5, %v135_v31 }
 0x121   :  { %v125_v34 = vsub.f32 1.5, %v124_v32 }
 0x122   :  { %v137_v35 = vsub.f32 1.5, %v136_v33 }
 0x123   :  { %v126_v36 = vmul.f32 %v214_v26, %v125_v34 }
 0x124   :  { %v138_v37 = vmul.f32 %v216_v27, %v137_v35 }
 0x125   :  { %v127_v38 = vmul.f32 %v126_v36, %v119_v24 }
 0x126   :  { %v139_v40 = vmul.f32 %v138_v37, %v120_v25 }
 0x127   :  { %v129_v41 = vsel %vm128_vm1, %v119_v24, %v127_v38 }
 0x128   :  { %v132_v44 = vsel %vm130_vm2, %v131_v39, %v129_v41  ;;  %v141_v45 = vsel %vm140_vm3, %v120_v25, %v139_v40 }
 0x129   :  { %v144_v46 = vsel %vm142_vm4, %v143_v42, %v141_v45  ;;  %v151_v47 = vperm.slane %v132_v44, 0 }
 0x12a   :  { %v152_v48 = vperm.slane %v144_v46, 0 }
 0x12b   :  { %v153_v50 = vmul.f32 %v151_v47, %v149_v43 }
 0x12c   :  { %v154_v52 = vmul.f32 %v152_v48, %v149_v43 }
 0x12d   :  { %v176_v53 = vadd.f32 %v175_v49, %v153_v50 }
 0x12e   :  { %v196_v54 = vadd.f32 %v195_v51, %v154_v52 }
 0x12f   :  { %199 = vst.msk [vmem:[%s280_s4] sm:$0xff] %vm198_vm5, %v176_v53 }
 0x130   :  { %200 = vst.msk [vmem:[%s280_s4 + $0x8] sm:$0xff] %vm198_vm5, %v196_v54 }

</bundles_post_ra>
